<compile_context>
chip_gen: v7x
topology: tpu7x:2x2x1
jax: 0.10.0
libtpu: 0.0.40
codegen_flags: <defaults>
</compile_context>

<pallas_src>
import functools
import math

import jax
import jax.numpy as jnp
from jax import lax
from jax.experimental import pallas as pl
from jax.experimental.pallas import tpu as pltpu


def _flash_attn_kernel(q_ref, k_ref, v_ref, o_ref, m_ref, l_ref, acc_ref, *, scale2):
    """One (batch, head, q-tile, kv-tile) step of online-softmax attention.

    q_ref: (TQ, attn_ch)   k_ref/v_ref: (TK, attn_ch)   o_ref: (TQ, attn_ch)
    m_ref/l_ref: (TQ, 1) f32 scratch     acc_ref: (TQ, attn_ch) f32 scratch
    """
    ki = pl.program_id(3)

    @pl.when(ki == 0)
    def _init():
        m_ref[...] = jnp.full(m_ref.shape, -jnp.inf, dtype=jnp.float32)
        l_ref[...] = jnp.zeros(l_ref.shape, dtype=jnp.float32)
        acc_ref[...] = jnp.zeros(acc_ref.shape, dtype=jnp.float32)

    # Native-dtype operands on the MXU; combined scale folded into q only.
    q = q_ref[...] * scale2
    # s[t, s'] = sum_c q[t, c] * k[s', c]  (contract channel axes, no explicit k.T)
    s = lax.dot_general(q, k_ref[...], (((1,), (1,)), ((), ())),
                        preferred_element_type=jnp.float32)          # (TQ, TK) f32

    m_prev = m_ref[...]
    m_new = jnp.maximum(m_prev, jnp.max(s, axis=-1, keepdims=True))  # (TQ, 1)
    alpha = jnp.exp(m_prev - m_new)                                  # rescale old stats
    p = jnp.exp(s - m_new)                                           # (TQ, TK) f32
    l_ref[...] = alpha * l_ref[...] + jnp.sum(p, axis=-1, keepdims=True)
    # Single cast of the weights to V's dtype -> native-dtype PV matmul on MXU.
    acc_ref[...] = alpha * acc_ref[...] + lax.dot_general(
        p.astype(v_ref.dtype), v_ref[...], (((1,), (0,)), ((), ())),
        preferred_element_type=jnp.float32)
    m_ref[...] = m_new

    @pl.when(ki == pl.num_programs(3) - 1)
    def _finalize():
        # Exact reciprocal once per q tile (negligible cost; keeps tolerances tight).
        inv_l = pl.reciprocal(l_ref[...], approx=False)
        o_ref[...] = (acc_ref[...] * inv_l).astype(o_ref.dtype)


def _pick_tile(n, target=256):
    """Largest tile <= target that divides n and keeps blocks (8,128)-legal."""
    if n <= target:
        return n
    best = None
    for t in range(8, target + 1, 8):
        if n % t == 0:
            best = t
    return best if best is not None else n  # full dim is always legal


def _vmem_limit_bytes(tq, tk, attn_ch, itemsize):
    # Double-buffered q/out + k/v tiles, f32 scratch, live f32 logits; 4x headroom.
    tiles = 2 * itemsize * (2 * tq * attn_ch + 2 * tk * attn_ch)
    scratch = 4 * tq * (attn_ch + 2)
    logits = 4 * tq * tk * 2
    est = 4 * (tiles + scratch + logits)
    return int(min(32 * 1024 * 1024, max(16 * 1024 * 1024, est)))


def qkv_multihead_attention(qkv, heads, q_tile=None, kv_tile=None):
    """Pallas implementation of QKVMultiheadAttention.forward.

    qkv: (bs, n_ctx, width) with width = heads * 3 * attn_ch.
    returns: (bs, n_ctx, heads * attn_ch)
    """
    bs, n_ctx, width = qkv.shape
    attn_ch = width // heads // 3
    scale = 1.0 / math.sqrt(math.sqrt(attn_ch))
    scale2 = scale * scale  # == 1/sqrt(attn_ch), folded into q inside the kernel

    # Split q/k/v and move heads next to batch. The (bs, heads, n_ctx, attn_ch)
    # layout keeps every BlockSpec's minor-two dims full / 8-aligned and keeps
    # the in-kernel matmuls plain 2-D MXU calls.
    qkv_r = qkv.reshape(bs, n_ctx, heads, 3 * attn_ch)
    q = qkv_r[..., 0 * attn_ch:1 * attn_ch].transpose(0, 2, 1, 3)
    k = qkv_r[..., 1 * attn_ch:2 * attn_ch].transpose(0, 2, 1, 3)
    v = qkv_r[..., 2 * attn_ch:3 * attn_ch].transpose(0, 2, 1, 3)

    tq = q_tile if q_tile is not None else _pick_tile(n_ctx)
    tk = kv_tile if kv_tile is not None else _pick_tile(n_ctx)
    assert n_ctx % tq == 0 and n_ctx % tk == 0, "tiles must divide n_ctx"
    nq, nk = n_ctx // tq, n_ctx // tk

    kernel = functools.partial(_flash_attn_kernel, scale2=scale2)

    q_spec = pl.BlockSpec((None, None, tq, attn_ch), lambda b, h, qi, ki: (b, h, qi, 0))
    kv_spec = pl.BlockSpec((None, None, tk, attn_ch), lambda b, h, qi, ki: (b, h, ki, 0))
    o_spec = pl.BlockSpec((None, None, tq, attn_ch), lambda b, h, qi, ki: (b, h, qi, 0))

    out_bhtc = pl.pallas_call(
        kernel,
        out_shape=jax.ShapeDtypeStruct((bs, heads, n_ctx, attn_ch), qkv.dtype),
        grid_spec=pltpu.PrefetchScalarGridSpec(
            num_scalar_prefetch=0,
            grid=(bs, heads, nq, nk),
            in_specs=[q_spec, kv_spec, kv_spec],
            out_specs=o_spec,
            scratch_shapes=[
                pltpu.VMEM((tq, 1), jnp.float32),        # running max m
                pltpu.VMEM((tq, 1), jnp.float32),        # running sum l
                pltpu.VMEM((tq, attn_ch), jnp.float32),  # output accumulator
            ],
        ),
        compiler_params=pltpu.CompilerParams(
            dimension_semantics=("parallel", "parallel", "parallel", "arbitrary"),
            vmem_limit_bytes=_vmem_limit_bytes(tq, tk, attn_ch, qkv.dtype.itemsize),
        ),
    )(q, k, v)

    # (bs, heads, n_ctx, attn_ch) -> (bs, n_ctx, heads*attn_ch), matching torch's
    # 'bhts,bshc->bthc' einsum followed by reshape(bs, n_ctx, -1).
    return out_bhtc.transpose(0, 2, 1, 3).reshape(bs, n_ctx, heads * attn_ch)


def _reference(qkv, heads):
    # Pure-JAX reference mirroring the torch module exactly.
    bs, n_ctx, width = qkv.shape
    attn_ch = width // heads // 3
    scale = 1.0 / math.sqrt(math.sqrt(attn_ch))
    qkv_r = qkv.reshape(bs, n_ctx, heads, -1)
    q, k, v = jnp.split(qkv_r, 3, axis=-1)
    weight = jnp.einsum('bthc,bshc->bhts', q * scale, k * scale)
    weight = jax.nn.softmax(weight.astype(jnp.float32), axis=-1).astype(weight.dtype)
    return jnp.einsum('bhts,bshc->bthc', weight, v).reshape(bs, n_ctx, -1)


if __name__ == "__main__":
    key1, key2 = jax.random.split(jax.random.PRNGKey(0))

    # Case 1: tiny shapes consistent with the module (single kv tile).
    bs, n_ctx, heads, attn_ch = 2, 8, 4, 8
    width = heads * 3 * attn_ch
    qkv = jax.random.normal(key1, (bs, n_ctx, width), dtype=jnp.float32)
    out = jax.block_until_ready(qkv_multihead_attention(qkv, heads))
    ref = _reference(qkv, heads)
    assert out.shape == (bs, n_ctx, heads * attn_ch)
    assert jnp.allclose(out, ref, atol=2e-5, rtol=2e-5), "case 1 mismatch vs reference"

    # Case 2: longer context with forced small tiles so the multi-kv-tile
    # online-softmax path is exercised.
    bs2, n_ctx2, heads2, attn_ch2 = 2, 64, 4, 8
    width2 = heads2 * 3 * attn_ch2
    qkv2 = jax.random.normal(key2, (bs2, n_ctx2, width2), dtype=jnp.float32)
    out2 = jax.block_until_ready(
        qkv_multihead_attention(qkv2, heads2, q_tile=16, kv_tile=16))
    ref2 = _reference(qkv2, heads2)
    assert out2.shape == (bs2, n_ctx2, heads2 * attn_ch2)
    assert jnp.allclose(out2, ref2, atol=2e-5, rtol=2e-5), "case 2 mismatch vs reference"

    print("KERNEL_OK")
</pallas_src>

<mosaic_0001>
module attributes {stable_mosaic.version = 11 : i64} {
  func.func @_flash_attn_kernel(%arg0: i32, %arg1: i32, %arg2: i32, %arg3: i32, %arg4: memref<1x1x8x8xf32, #tpu.memory_space<vmem>>, %arg5: memref<1x1x8x8xf32, #tpu.memory_space<vmem>>, %arg6: memref<1x1x8x8xf32, #tpu.memory_space<vmem>>, %arg7: memref<1x1x8x8xf32, #tpu.memory_space<vmem>>, %arg8: memref<8x1xf32, #tpu.memory_space<vmem>>, %arg9: memref<8x1xf32, #tpu.memory_space<vmem>>, %arg10: memref<8x8xf32, #tpu.memory_space<vmem>>) attributes {dimension_semantics = [#tpu.dimension_semantics<parallel>, #tpu.dimension_semantics<parallel>, #tpu.dimension_semantics<parallel>, #tpu.dimension_semantics<arbitrary>], iteration_bounds = array<i64: 2, 4, 1, 1>, scalar_prefetch = 0 : i64, scratch_operands = 3 : i64, tpu.core_type = #tpu.core_type<tc>, window_params = [{transform_indices = @transform_0, window_bounds = array<i64: 1, 1, 8, 8>}, {transform_indices = @transform_1, window_bounds = array<i64: 1, 1, 8, 8>}, {transform_indices = @transform_2, window_bounds = array<i64: 1, 1, 8, 8>}, {transform_indices = @transform_3, window_bounds = array<i64: 1, 1, 8, 8>}]} {
    %c0_i32 = arith.constant 0 : i32
    %0 = arith.cmpi eq, %arg3, %c0_i32 : i32
    %1 = arith.extui %0 : i1 to i32
    %c0_i32_0 = arith.constant 0 : i32
    %2 = arith.cmpi ne, %1, %c0_i32_0 : i32
    scf.if %2 {
      %cst_30 = arith.constant 0xFF800000 : f32
      %37 = vector.broadcast %cst_30 : f32 to vector<8x1xf32>
      %c0_31 = arith.constant 0 : index
      %c0_32 = arith.constant 0 : index
      %38 = vector.load %arg8[%c0_31, %c0_32] : memref<8x1xf32, #tpu.memory_space<vmem>>, vector<8x1xf32>
      tpu.vector_store %arg8[%c0_31, %c0_32], %37 {strides = array<i32>} : memref<8x1xf32, #tpu.memory_space<vmem>>, vector<8x1xf32>,
      %cst_33 = arith.constant 0.000000e+00 : f32
      %39 = vector.broadcast %cst_33 : f32 to vector<8x1xf32>
      %c0_34 = arith.constant 0 : index
      %c0_35 = arith.constant 0 : index
      %40 = vector.load %arg9[%c0_34, %c0_35] : memref<8x1xf32, #tpu.memory_space<vmem>>, vector<8x1xf32>
      tpu.vector_store %arg9[%c0_34, %c0_35], %39 {strides = array<i32>} : memref<8x1xf32, #tpu.memory_space<vmem>>, vector<8x1xf32>,
      %cst_36 = arith.constant 0.000000e+00 : f32
      %41 = vector.broadcast %cst_36 : f32 to vector<8x8xf32>
      %c0_37 = arith.constant 0 : index
      %c0_38 = arith.constant 0 : index
      %42 = vector.load %arg10[%c0_37, %c0_38] : memref<8x8xf32, #tpu.memory_space<vmem>>, vector<8x8xf32>
      tpu.vector_store %arg10[%c0_37, %c0_38], %41 {strides = array<i32>} : memref<8x8xf32, #tpu.memory_space<vmem>>, vector<8x8xf32>,
    } else {
    }
    %c0 = arith.constant 0 : index
    %c0_1 = arith.constant 0 : index
    %c0_2 = arith.constant 0 : index
    %c0_3 = arith.constant 0 : index
    %3 = vector.load %arg4[%c0, %c0_1, %c0_2, %c0_3] : memref<1x1x8x8xf32, #tpu.memory_space<vmem>>, vector<1x1x8x8xf32>
    %4 = vector.shape_cast %3 : vector<1x1x8x8xf32> to vector<8x8xf32>
    %cst = arith.constant 0.353553385 : f32
    %5 = vector.broadcast %cst : f32 to vector<8x8xf32>
    %6 = arith.mulf %4, %5 : vector<8x8xf32>
    %c0_4 = arith.constant 0 : index
    %c0_5 = arith.constant 0 : index
    %c0_6 = arith.constant 0 : index
    %c0_7 = arith.constant 0 : index
    %7 = vector.load %arg5[%c0_4, %c0_5, %c0_6, %c0_7] : memref<1x1x8x8xf32, #tpu.memory_space<vmem>>, vector<1x1x8x8xf32>
    %8 = vector.shape_cast %7 : vector<1x1x8x8xf32> to vector<8x8xf32>
    %cst_8 = arith.constant dense<0.000000e+00> : vector<8x8xf32>
    %9 = tpu.matmul %6, %8, %cst_8 {dimension_numbers = #tpu.dot_dimension_numbers<[1], [1], [0], [0], [0, 0, 1, 0], [], []>} : vector<8x8xf32>, vector<8x8xf32>, vector<8x8xf32> -> vector<8x8xf32>
    %c0_9 = arith.constant 0 : index
    %c0_10 = arith.constant 0 : index
    %10 = vector.load %arg8[%c0_9, %c0_10] : memref<8x1xf32, #tpu.memory_space<vmem>>, vector<8x1xf32>
    %cst_11 = arith.constant dense<0xFF800000> : vector<8xf32>
    %11 = vector.multi_reduction <maximumf>, %9, %cst_11 [1] : vector<8x8xf32> to vector<8xf32>
    %12 = vector.shape_cast %11 : vector<8xf32> to vector<8x1xf32>
    %13 = arith.maximumf %10, %12 : vector<8x1xf32>
    %14 = arith.subf %10, %13 : vector<8x1xf32>
    %15 = math.exp %14 : vector<8x1xf32>
    %16 = vector.broadcast %13 : vector<8x1xf32> to vector<8x8xf32>
    %17 = arith.subf %9, %16 : vector<8x8xf32>
    %18 = math.exp %17 : vector<8x8xf32>
    %c0_12 = arith.constant 0 : index
    %c0_13 = arith.constant 0 : index
    %19 = vector.load %arg9[%c0_12, %c0_13] : memref<8x1xf32, #tpu.memory_space<vmem>>, vector<8x1xf32>
    %20 = arith.mulf %15, %19 : vector<8x1xf32>
    %cst_14 = arith.constant dense<0.000000e+00> : vector<8xf32>
    %21 = vector.multi_reduction <add>, %18, %cst_14 [1] : vector<8x8xf32> to vector<8xf32>
    %22 = vector.shape_cast %21 : vector<8xf32> to vector<8x1xf32>
    %23 = arith.addf %20, %22 : vector<8x1xf32>
    %c0_15 = arith.constant 0 : index
    %c0_16 = arith.constant 0 : index
    %24 = vector.load %arg9[%c0_15, %c0_16] : memref<8x1xf32, #tpu.memory_space<vmem>>, vector<8x1xf32>
    tpu.vector_store %arg9[%c0_15, %c0_16], %23 {strides = array<i32>} : memref<8x1xf32, #tpu.memory_space<vmem>>, vector<8x1xf32>,
    %c0_17 = arith.constant 0 : index
    %c0_18 = arith.constant 0 : index
    %25 = vector.load %arg10[%c0_17, %c0_18] : memref<8x8xf32, #tpu.memory_space<vmem>>, vector<8x8xf32>
    %26 = vector.broadcast %15 : vector<8x1xf32> to vector<8x8xf32>
    %27 = arith.mulf %26, %25 : vector<8x8xf32>
    %c0_19 = arith.constant 0 : index
    %c0_20 = arith.constant 0 : index
    %c0_21 = arith.constant 0 : index
    %c0_22 = arith.constant 0 : index
    %28 = vector.load %arg6[%c0_19, %c0_20, %c0_21, %c0_22] : memref<1x1x8x8xf32, #tpu.memory_space<vmem>>, vector<1x1x8x8xf32>
    %29 = vector.shape_cast %28 : vector<1x1x8x8xf32> to vector<8x8xf32>
    %cst_23 = arith.constant dense<0.000000e+00> : vector<8x8xf32>
    %30 = tpu.matmul %18, %29, %cst_23 {dimension_numbers = #tpu.dot_dimension_numbers<[1], [0], [0], [1], [0, 0, 1, 1], [], []>} : vector<8x8xf32>, vector<8x8xf32>, vector<8x8xf32> -> vector<8x8xf32>
    %31 = arith.addf %27, %30 : vector<8x8xf32>
    %c0_24 = arith.constant 0 : index
    %c0_25 = arith.constant 0 : index
    %32 = vector.load %arg10[%c0_24, %c0_25] : memref<8x8xf32, #tpu.memory_space<vmem>>, vector<8x8xf32>
    tpu.vector_store %arg10[%c0_24, %c0_25], %31 {strides = array<i32>} : memref<8x8xf32, #tpu.memory_space<vmem>>, vector<8x8xf32>,
    %c0_26 = arith.constant 0 : index
    %c0_27 = arith.constant 0 : index
    %33 = vector.load %arg8[%c0_26, %c0_27] : memref<8x1xf32, #tpu.memory_space<vmem>>, vector<8x1xf32>
    tpu.vector_store %arg8[%c0_26, %c0_27], %13 {strides = array<i32>} : memref<8x1xf32, #tpu.memory_space<vmem>>, vector<8x1xf32>,
    %c0_i32_28 = arith.constant 0 : i32
    %34 = arith.cmpi eq, %arg3, %c0_i32_28 : i32
    %35 = arith.extui %34 : i1 to i32
    %c0_i32_29 = arith.constant 0 : i32
    %36 = arith.cmpi ne, %35, %c0_i32_29 : i32
    scf.if %36 {
      %c0_30 = arith.constant 0 : index
      %c0_31 = arith.constant 0 : index
      %37 = vector.load %arg9[%c0_30, %c0_31] : memref<8x1xf32, #tpu.memory_space<vmem>>, vector<8x1xf32>
      %38 = tpu.reciprocal %37 : vector<8x1xf32> -> vector<8x1xf32>
      %c0_32 = arith.constant 0 : index
      %c0_33 = arith.constant 0 : index
      %39 = vector.load %arg10[%c0_32, %c0_33] : memref<8x8xf32, #tpu.memory_space<vmem>>, vector<8x8xf32>
      %40 = vector.broadcast %38 : vector<8x1xf32> to vector<8x8xf32>
      %41 = arith.mulf %39, %40 : vector<8x8xf32>
      %c0_34 = arith.constant 0 : index
      %c0_35 = arith.constant 0 : index
      %c0_36 = arith.constant 0 : index
      %c0_37 = arith.constant 0 : index
      %42 = vector.load %arg7[%c0_34, %c0_35, %c0_36, %c0_37] : memref<1x1x8x8xf32, #tpu.memory_space<vmem>>, vector<1x1x8x8xf32>
      %43 = vector.shape_cast %42 : vector<1x1x8x8xf32> to vector<8x8xf32>
      %44 = vector.shape_cast %41 : vector<8x8xf32> to vector<1x1x8x8xf32>
      tpu.vector_store %arg7[%c0_34, %c0_35, %c0_36, %c0_37], %44 {strides = array<i32>} : memref<1x1x8x8xf32, #tpu.memory_space<vmem>>, vector<1x1x8x8xf32>,
    } else {
    }
    return
  }
  func.func @transform_0(%arg0: i32, %arg1: i32, %arg2: i32, %arg3: i32) -> (i32, i32, i32, i32) {
    %c0_i32 = arith.constant 0 : i32
    %c0_i32_0 = arith.constant 0 : i32
    return %arg0, %arg1, %arg2, %c0_i32 : i32, i32, i32, i32
  }
  func.func @transform_1(%arg0: i32, %arg1: i32, %arg2: i32, %arg3: i32) -> (i32, i32, i32, i32) {
    %c0_i32 = arith.constant 0 : i32
    %c0_i32_0 = arith.constant 0 : i32
    return %arg0, %arg1, %arg3, %c0_i32 : i32, i32, i32, i32
  }
  func.func @transform_2(%arg0: i32, %arg1: i32, %arg2: i32, %arg3: i32) -> (i32, i32, i32, i32) {
    %c0_i32 = arith.constant 0 : i32
    %c0_i32_0 = arith.constant 0 : i32
    return %arg0, %arg1, %arg3, %c0_i32 : i32, i32, i32, i32
  }
  func.func @transform_3(%arg0: i32, %arg1: i32, %arg2: i32, %arg3: i32) -> (i32, i32, i32, i32) {
    %c0_i32 = arith.constant 0 : i32
    %c0_i32_0 = arith.constant 0 : i32
    return %arg0, %arg1, %arg2, %c0_i32 : i32, i32, i32, i32
  }
}

</mosaic_0001>

<bundles_post_ra>
// kernel: tpu_custom_call.1
= control target key start
LH: loop header
LB: loop body
LE: loop exit
PB: predicated region body
PF: predicated region fallthrough
CT: control target
= control target key end

     0   :  { %s1337_s0 = inlined_call_operand.hbm [shape: f32[2,4,8,8], index: 0, kind: input, shape index: {}]   ;;  %s1338_s1 = inlined_call_operand.hbm [shape: f32[2,4,8,8], index: 1, kind: input, shape index: {}]   ;;  %s1339_s2 = inlined_call_operand.hbm [shape: f32[2,4,8,8], index: 2, kind: input, shape index: {}]   ;;  %s1340_s3 = inlined_call_operand.hbm [shape: f32[2,4,8,8], index: 3, kind: output, shape index: {}]  }
   0x1   :  { %1350 = sst [smem:[#allocation21_spill]] %s1338_s1 }
   0x2   :  { %8 = vsyncpa [#allocation6], 0 }
   0x3   :  { %10 = vsyncpa [#allocation6 + $0x1], 0 }
   0x4   :  { %11 = vsyncpa [#allocation9], 0 }
   0x5   :  { %13 = vsyncpa [#allocation9 + $0x1], 0 }
   0x6   :  { %14 = vsyncpa [#allocation7], 0 }
   0x7   :  { %16 = vsyncpa [#allocation7 + $0x1], 0  ;;  %s1039_s12 = smov 0   ;;  %s1041_s13 = smov 0  }
   0x8   :  { %s1043_s14 = smov 0   ;;  %s1045_s15 = smov 0  }
   0x9   :  { %s1047_s16 = smov 0   ;;  %s1049_s17 = smov 0  }
   0xa   :  { %s1051_s18 = smov 0   ;;  %s1053_s19 = smov 0  }
   0xb LB: > { %1351 = sst [smem:[#allocation15_spill]] %s1001_s17  ;;  %s1080_s20 = sadd.s32 4294967295, %s1009_s19   ;;  %s1009_s19 = sphi %s1053_s19, %s22_s19   ;;  %s1005_s18 = sphi %s1051_s18, %s1378_s18   ;;  %s1001_s17 = sphi %s1049_s17, %s1377_s17   ;;  %s997_s16 = sphi %s1047_s16, %s1376_s16   ;;  %s993_s15 = sphi %s1045_s15, %s1375_s15   ;;  %s989_s14 = sphi %s1043_s14, %s1381_s14   ;;  %s985_s13 = sphi %s1041_s13, %s1380_s13   ;;  %s981_s12 = sphi %s1039_s12, %s1379_s12  }
   0xc   : > { %1352 = sst [smem:[#allocation16_spill]] %s1005_s18  ;;  %s678_s21 = sadd.s32 4294967294, %s1009_s19  }
   0xd   : > { %s44_s22 = sadd.s32 1, %s1001_s17  ;;  %s48_s23 = sadd.s32 1, %s1005_s18 }
   0xe   : > { %p46_p0 = scmp.ge.s32.totalorder %s44_s22, 4  ;;  %s59_s24 = sadd.s32 1, %s989_s14 }
   0xf   : > { %p66_p1 = scmp.ne.s32.totalorder %s989_s14, %s985_s13  ;;  %p67_p2 = scmp.eq.s32.totalorder %s1009_s19, 0 }
  0x10   : > { %s1383_s22 = smov (%p46_p0, %s44_s22), 0  ;;  %s1385_s23 = smov (!%p46_p0, %s48_s23), %s1005_s18 }
  0x11   : > { %1353 = sst [smem:[#allocation17_spill]] %s1383_s22  ;;  %s53_s25 = ssub.s32 %s1001_s17, %s1383_s22 }
  0x12   : > { %p1094_p3 = por %p67_p2, %p66_p1  ;;  %p50_p4 = scmp.ge.s32.totalorder %s1385_s23, 2 }
  0x13   : > { %p72_p5 = scmp.ne.s32.totalorder %s985_s13, %s981_s12  ;;  %p73_p6 = scmp.eq.s32.totalorder %s1080_s20, 0 }
  0x14   : > { %p160_p7 = scmp.eq.s32.totalorder %s1080_s20, 7  ;;  %s1387_s23 = smov (%p50_p4, %s1385_s23), 0 }
  0x15   : > { %1355 = sst [smem:[#allocation18_spill]] %s1387_s23  ;;  %p1104_p8 = por %p73_p6, %p72_p5 }
  0x16   : > { %p1108_p9 = por %p160_p7, %p66_p1  ;;  %s52_s29 = ssub.s32 %s1005_s18, %s1387_s23 }
  0x17   : > { %s1356_s27 = scalar_select %p1104_p8, 1, 0 }
  0x18   : > { %s1357_s28 = scalar_select %p1108_p9, 1, 0 }
  0x19   : > { %p166_p10 = scmp.eq.s32.totalorder %s678_s21, 7  ;;  %s54_s30 = sor.u32 %s53_s25, %s52_s29 }
  0x1a   : > { %p57_p11 = scmp.eq.s32.totalorder %s54_s30, 0  ;;  %p739_p13 = scmp.lt.s32.totalorder %s1009_s19, 8 }
  0x1b   : > { %p1114_p12 = por %p166_p10, %p72_p5  ;;  %s1341_s5 = sand.u32 1, %s989_s14  }
  0x1c   : > { %s1121_s6 = scalar_select %p57_p11, %s989_s14, %s59_s24  }
  0x1d   : > { %s1358_s4 = scalar_select %p1114_p12, 1, 0 }
  0x1e   : > { %1360 = sst [smem:[#allocation20_spill]] %s1121_s6  ;;  %s1125_s7 = sshll.u32 %s1341_s5, 3 }
  0x1f   : > { %1359 = sst [smem:[#allocation19_spill]] %s1358_s4  ;;  %s682_s8 = sshll.u32 %s1005_s18, 2 }
  0x20   : > { %s196_s9 = sadd.s32 %s1001_s17, %s682_s8  ;;  %p1131_p0 = pnand %p739_p13, %p1094_p3 }
  0x21   : > { %s1135_s11 = sshll.u32 %s196_s9, 7  ;;  %s207_s21 = sand.u32 1, %s1009_s19  }
  0x22   : > { %s1361_s10 = scalar_select %p1131_p0, 1, 0 }
  0x23   : > { %s1362_s1 = sld [smem:[#allocation21_spill]]  ;;  %s211_s30 = scalar_lea.vmem [#allocation8], %s1125_s7 }
  0x24   : > { %s221_s26 = sshll.u32 %s211_s30, 4  ;;  %s1149_s8 = scalar_lea.sflag [#allocation9], %s207_s21  ;;  %s1146_s26 = int_to_ptr.vmem [resolvable:$true] %s221_s26 }
  0x25   : > { %p1155_p4 = pneg %p1131_p0 }
  0x29   : > { %s1142_s24 = scalar_lea.hbm %s1362_s1, %s1135_s11  ;;  %s822_s30 = scalar_lea.hbm %s1362_s1, 1024 }
  0x2a   : > { %s817_s9 = scalar_lea.hbm %s1142_s24, 128  ;;  %p823_p7 = scmp.lt.u32.totalorder %s1142_s24, %s1362_s1 }
  0x2b   : > { %p818_p3 = scmp.ne.s32.totalorder %s1142_s24, %s817_s9  ;;  %p824_p10 = scmp.lt.u32.totalorder %s822_s30, %s817_s9 }
  0x2c   : > { %p826_p13 = scmp.lt.u32.totalorder %s817_s9, %s1142_s24 }
  0x2d   : > { %p820_p5 = pnand %p1155_p4, %p818_p3  ;;  %p825_p11 = por %p824_p10, %p823_p7 }
  0x2f   : > { %p821_p6 = pneg %p820_p5  ;;  %p827_p1 = por %p826_p13, %p825_p11 }
  0x31   : > { %p828_p2 = pnand %p827_p1, %p821_p6 }
  0x33   : > { %831 = shalt.err (!%p828_p2)
}
  0x34   : > { %s832_s21 = scalar_lea.vmem %s1146_s26, 128  ;;  %s1011_s25 = smov [#allocation8]  }
  0x35   : > { %p833_p3 = scmp.ne.s32.totalorder %s1146_s26, %s832_s21  ;;  %s837_s29 = sshll.u32 %s1011_s25, 4  ;;  %s838_s29 = int_to_ptr.vmem [resolvable:$false] %s837_s29 }
  0x36   : > { %s839_s22 = scalar_lea.vmem %s838_s29, 256  ;;  %p840_p9 = scmp.lt.s32.totalorder %s1146_s26, %s838_s29 }
  0x37   : > { %p835_p5 = pnand %p833_p3, %p1155_p4  ;;  %p841_p8 = scmp.lt.s32.totalorder %s839_s22, %s832_s21 }
  0x39   : > { %p836_p12 = pneg %p835_p5  ;;  %p842_p7 = por %p841_p8, %p840_p9 }
  0x3b   : > { %p843_p10 = pnand %p842_p7, %p836_p12 }
  0x3d   : > { %846 = shalt.err (!%p843_p10)
}
  0x3e   : > { %731 = dma.hbm_to_vmem [thread:$0]  (!%p1131_p0), %s1142_s24, 128, %s1146_s26, %s1149_s8  }
  0x3f   : > { %p1364_p1 = scmp.lt.s32.totalorder %s1009_s19, 9  ;;  %p1365_p2 = scmp.ge.s32.totalorder %s1009_s19, 1 }
  0x40   : > { %s1191_s21 = scalar_lea.hbm %s1337_s0, %s1135_s11  ;;  %s190_s25 = scalar_lea.vmem [#allocation5], %s1125_s7 }
  0x41   : > { %p1183_p6 = pnand %p1365_p2, %p1364_p1  ;;  %s200_s29 = sshll.u32 %s190_s25, 4  ;;  %s1194_s29 = int_to_ptr.vmem [resolvable:$true] %s200_s29 }
  0x42   : > { %s1200_s22 = scalar_lea.hbm %s1339_s2, %s1135_s11  ;;  %s1367_s1 = sand.u32 1, %s989_s14  }
  0x43   : > { %s1366_s23 = scalar_select %p1183_p6, 1, 0 }
  0x44   : > { %s187_s18 = scalar_lea.sflag [#allocation6], %s1367_s1  ;;  %s847_s17 = scalar_lea.hbm %s1191_s21, 128 }
  0x45   : > { %p848_p8 = scmp.ne.s32.totalorder %s1191_s21, %s847_s17  ;;  %s852_s6 = scalar_lea.hbm %s1337_s0, 1024 }
  0x46   : > { %p853_p11 = scmp.lt.u32.totalorder %s1191_s21, %s1337_s0  ;;  %p854_p13 = scmp.lt.u32.totalorder %s852_s6, %s847_s17 }
  0x47   : > { %p850_p9 = pnand %p848_p8, %p1155_p4  ;;  %p856_p5 = scmp.lt.u32.totalorder %s847_s17, %s1191_s21 }
  0x48   : > { %p855_p3 = por %p854_p13, %p853_p11 }
  0x49   : > { %p851_p12 = pneg %p850_p9 }
  0x4a   : > { %p857_p7 = por %p856_p5, %p855_p3 }
  0x4c   : > { %p858_p10 = pnand %p857_p7, %p851_p12 }
  0x4e   : > { %861 = shalt.err (!%p858_p10)
}
  0x4f   : > { %s862_s1 = scalar_lea.vmem %s1194_s29, 128  ;;  %s1012_s11 = smov [#allocation5]  }
  0x50   : > { %p863_p1 = scmp.ne.s32.totalorder %s1194_s29, %s862_s1  ;;  %s867_s24 = sshll.u32 %s1012_s11, 4  ;;  %s868_s24 = int_to_ptr.vmem [resolvable:$false] %s867_s24 }
  0x51   : > { %s869_s4 = scalar_lea.vmem %s868_s24, 256  ;;  %p870_p9 = scmp.lt.s32.totalorder %s1194_s29, %s868_s24 }
  0x52   : > { %p865_p2 = pnand %p863_p1, %p1155_p4  ;;  %p871_p6 = scmp.lt.s32.totalorder %s869_s4, %s862_s1 }
  0x54   : > { %p866_p8 = pneg %p865_p2  ;;  %p872_p11 = por %p871_p6, %p870_p9 }
  0x56   : > { %p873_p13 = pnand %p872_p11, %p866_p8 }
  0x58   : > { %876 = shalt.err (!%p873_p13)
}
  0x59   : > { %728 = dma.hbm_to_vmem [thread:$0]  (!%p1131_p0), %s1191_s21, 128, %s1194_s29, %s187_s18  }
  0x5a   : > { %s232_s17 = scalar_lea.vmem [#allocation10], %s1125_s7  ;;  %s877_s26 = scalar_lea.hbm %s1200_s22, 128 }
  0x5b   : > { %s242_s6 = sshll.u32 %s232_s17, 4  ;;  %p878_p12 = scmp.ne.s32.totalorder %s1200_s22, %s877_s26  ;;  %s243_s6 = int_to_ptr.vmem [resolvable:$true] %s242_s6 }
  0x5c   : > { %s882_s25 = scalar_lea.hbm %s1339_s2, 1024  ;;  %p883_p5 = scmp.lt.u32.totalorder %s1200_s22, %s1339_s2 }
  0x5d   : > { %p880_p6 = pnand %p878_p12, %p1155_p4  ;;  %p884_p7 = scmp.lt.u32.totalorder %s882_s25, %s877_s26 }
  0x5e   : > { %p886_p1 = scmp.lt.u32.totalorder %s877_s26, %s1200_s22 }
  0x5f   : > { %p881_p3 = pneg %p880_p6  ;;  %p885_p10 = por %p884_p7, %p883_p5 }
  0x61   : > { %p887_p2 = por %p886_p1, %p885_p10 }
  0x63   : > { %p888_p8 = pnand %p887_p2, %p881_p3 }
  0x65   : > { %891 = shalt.err (!%p888_p8)
}
  0x66   : > { %s892_s18 = scalar_lea.vmem %s243_s6, 128  ;;  %s1013_s7 = smov [#allocation10]  }
  0x67   : > { %p893_p9 = scmp.ne.s32.totalorder %s243_s6, %s892_s18  ;;  %s897_s21 = sshll.u32 %s1013_s7, 4  ;;  %s898_s21 = int_to_ptr.vmem [resolvable:$false] %s897_s21 }
  0x68   : > { %s899_s29 = scalar_lea.vmem %s898_s21, 256  ;;  %p900_p12 = scmp.lt.s32.totalorder %s243_s6, %s898_s21 }
  0x69   : > { %p895_p11 = pnand %p893_p9, %p1155_p4  ;;  %p901_p6 = scmp.lt.s32.totalorder %s899_s29, %s892_s18 }
  0x6b   : > { %p896_p13 = pneg %p895_p11  ;;  %p902_p0 = por %p901_p6, %p900_p12 }
  0x6d   : > { %p903_p5 = pnand %p902_p0, %p896_p13 }
  0x6f   : > { %906 = shalt.err (!%p903_p5)
}
  0x70   : > { %p1368_p7 = scmp.ne.s32.totalorder %s1361_s10, 0  ;;  %p1369_p3 = scmp.ne.s32.totalorder %s1366_s23, 0 }
  0x71   : > { %s1247_s5 = sand.u32 (!%p1369_p3), 1, %s985_s13   ;;  %p1370_p0 = scmp.ne.s32.totalorder (!%p1369_p3), %s1356_s27, 0 }
  0x72   : > { %734 = dma.hbm_to_vmem [thread:$0]  (!%p1368_p7), %s1200_s22, 128, %s243_s6, %s1149_s8  }
  0x73   : > { %251 = sbr.rel (%p1369_p3) target bundleno = 940 (0x3ac), region = 32  ;;  %s1250_s24 = sshll.u32 (!%p1369_p3), %s1247_s5, 3 }
  0x74   : > { %s254_s4 = scalar_lea.sflag (!%p1369_p3), [#allocation6], %s1247_s5  ;;  %s257_s17 = scalar_lea.vmem (!%p1369_p3), [#allocation5], %s1250_s24 }
  0x7a   : > { %968 = dma.done.wait (%p1370_p0), %s254_s4, 128  }
  0x7b   : > { %970 = vsyncadd (%p1370_p0), %s254_s4, 4294967168  ;;  %s262_s10 = sand.u32 1, %s1080_s20   ;;  %s266_s23 = scalar_lea.vmem [#allocation8], %s1250_s24 }
  0x7c   : > { %s263_s8 = scalar_lea.sflag [#allocation9], %s262_s10 }
  0x7d   : > { %972 = dma.done.wait (%p1370_p0), %s263_s8, 256  }
  0x7e   : > { %974 = vsyncadd (%p1370_p0), %s263_s8, 4294967040  ;;  %vm315_vm0 = vcmask 64512   ;;  %v1014_v0 = vmov 0.0   ;;  %vm1015_vm1 = vmmov 0   ;;  %v319_v1 = vld [vmem:[%s266_s23] sm:$0xff]  ;;  %v317_v2 = vld [vmem:[%s257_s17] sm:$0xff] }
  0x7f   : > { %707 = vmatprep.subr.mxu0 %v1014_v0  ;;  %316 = vst.msk [vmem:[#allocation4] sm:$0xff] %vm315_vm0, %v1014_v0  ;;  %709 = vmatprep.mubr.msk.f32.mxu0 %vm1015_vm1, %v1014_v0  ;;  %v318_v3 = vmul.f32 0.35355338, %v317_v2  ;;  %vm312_vm2 = vcmask 7168   ;;  %v1016_v4 = vmov -inf   ;;  %v1017_v8 = vmov 0  }
  0x80   : > { %712 = vmatprep.subr.mxu1 %v1014_v0  ;;  %714 = vmatprep.mubr.msk.f32.mxu1 %vm1015_vm1, %v1014_v0  ;;  %313 = vst.msk [vmem:[#allocation2] sm:$0xff] %vm312_vm2, %v1016_v4  ;;  %314 = vst.msk [vmem:[#allocation3] sm:$0xff] %vm312_vm2, %v1014_v0  ;;  %s275_s20 = scalar_lea.vmem [#allocation10], %s1250_s24  ;;  %s699_s27 = sshll.u32 %s997_s16, 2 }
  0x81   : > { %708 = vmatpush3.xpose.msk.msra.mxu0 %vm315_vm0, %v319_v1  ;;  %809 = vset.pattern.permute.xlu0 %v1017_v8  ;;  %v428_v13 = vld [vmem:[%s275_s20] sm:$0xff]  ;;  %s531_s22 = sadd.s32 %s993_s15, %s699_s27  ;;  %s307_s26 = scalar_lea.vmem [#allocation11], %s1250_s24 }
  0x82   : > { %810 = vset.pattern.permute.xlu1 %v1017_v8  ;;  %713 = vmatpush3.msra.mxu1 %v428_v13  ;;  %s700_s6 = sshll.u32 %s531_s22, 7  ;;  %s535_s9 = sshll.u32 %s307_s26, 4  ;;  %s1284_s9 = int_to_ptr.vmem [resolvable:$true] %s535_s9 }
  0x83   : > { %s1282_s1 = scalar_lea.hbm %s1340_s3, %s700_s6  ;;  %s519_s16 = scalar_lea.sflag [#allocation7], %s1247_s5 }
  0x84   : > { %710 = vmatmul.mubr.msk.f32.vlgmr.msra.gmra.mrb[0].mxu0 %vm315_vm0, %v318_v3  ;;  %s907_s15 = scalar_lea.vmem %s1284_s9, 128  ;;  %p1371_p10 = scmp.ne.s32.totalorder %s1357_s28, 0 }
  0x85   : > { %p908_p4 = scmp.ne.s32.totalorder %s1284_s9, %s907_s15  ;;  %s1018_s11 = smov [#allocation11]  }
  0x86   : > { %v421_v27 = vld [vmem:[#allocation4] sm:$0xff]  ;;  %s911_s18 = sshll.u32 %s1018_s11, 4  ;;  %s912_s18 = int_to_ptr.vmem [resolvable:$false] %s911_s18 }
  0x87   : > { %v397_v9 = vld [vmem:[#allocation2] sm:$0xff]  ;;  %v413_v21 = vld [vmem:[#allocation3] sm:$0xff]  ;;  %p909_p1 = pnand %p908_p4, %p1371_p10  ;;  %s913_s7 = scalar_lea.vmem %s912_s18, 256 }
  0x88   : > { %p914_p8 = scmp.lt.s32.totalorder %s1284_s9, %s912_s18  ;;  %p915_p9 = scmp.lt.s32.totalorder %s913_s7, %s907_s15 }
  0x89   : > { %p910_p2 = pneg %p909_p1 }
  0x8a   : > { %p916_p11 = por %p915_p9, %p914_p8 }
  0x8c   : > { %p917_p13 = pnand %p916_p11, %p910_p2 }
 0x157   : > { %v393_v5 = vpop.f32.mrb[0].mxu0 }
 0x158   : > { %v711_v6 = vpop.f32.mrb[1].mxu0  ;;  %v398_v7 = vsel %vm315_vm0, %v393_v5, -inf }
 0x159   : > { %399 = vmax.xlane.f32.xlu0 %v398_v7 }
 0x1e6   : > { %v400_v10 = vpop.xlane.xlu0 %399 }
 0x1e7   : > { %v401_v11 = vmax.f32 %v397_v9, %v400_v10 }
 0x1e9   : > { %v402_v12 = vsub.f32 %v397_v9, %v401_v11  ;;  %504 = vst.msk [vmem:[#allocation2] sm:$0xff] %vm312_vm2, %v401_v11  ;;  %407 = vperm.xlu0 %809, %v401_v11  }
 0x1eb   : > { %v403_v19 = vmul.f32 1.442695, %v402_v12 }
 0x268   : > { %v408_v14 = vpop.permute.xlu0 %407 }
 0x269   : > { %v410_v15 = vsub.f32 %v393_v5, %v408_v14 }
 0x26b   : > { %v411_v16 = vmul.f32 1.442695, %v410_v15 }
 0x26d   : > { %811 = vpow2.f32 %v411_v16 }
 0x26e   : > { %813 = vpow2.f32 %v403_v19 }
 0x277   : > { %v812_v17 = vpop.eup %811 }
 0x278   : > { %715 = vmatmul.mubr.msk.f32.vlgmr.msra.gmra.mrb[0].mxu1 %vm315_vm0, %v812_v17  ;;  %v415_v18 = vsel %vm315_vm0, %v812_v17, 0.0  ;;  %v814_v20 = vpop.eup %813 }
 0x279   : > { %416 = vadd.xlane.f32.xlu1 %v415_v18  ;;  %v414_v22 = vmul.f32 %v814_v20, %v413_v21 }
 0x28a   : > { %424 = vperm.xlu1 %810, %v814_v20  }
 0x306   : > { %v417_v23 = vpop.xlane.xlu1 %416 }
 0x307   : > { %v418_v24 = vadd.f32 %v417_v23, %v414_v22 }
 0x309   : > { %420 = vst.msk [vmem:[#allocation3] sm:$0xff] %vm312_vm2, %v418_v24 }
 0x30a   : > { %v425_v28 = vpop.permute.xlu1 %424 }
 0x30b   : > { %v427_v29 = vmul.f32 %v425_v28, %v421_v27 }
 0x310   : > { %v508_v25 = vld [vmem:[#allocation3] sm:$0xff] }
 0x311   : > { %815 = vrcp.f32 %v508_v25 }
 0x31b   : > { %v816_v26 = vpop.eup %815 }
 0x31c   : > { %513 = vperm.xlu1 %810, %v816_v26  }
 0x34b   : > { %v498_v30 = vpop.f32.mrb[0].mxu1 }
 0x34c   : > { %v502_v31 = vadd.f32 %v498_v30, %v427_v29  ;;  %v716_v32 = vpop.f32.mrb[1].mxu1 }
 0x34e   : > { %503 = vst.msk [vmem:[#allocation4] sm:$0xff] %vm315_vm0, %v502_v31 }
 0x355   : > { %v510_v33 = vld [vmem:[#allocation4] sm:$0xff] }
 0x39b   : > { %v514_v34 = vpop.permute.xlu1 %513 }
 0x39c   : > { %v516_v35 = vmul.f32 %v514_v34, %v510_v33 }
 0x39e   : > { %517 = vst.msk [vmem:[%s307_s26] sm:$0xff] %vm315_vm0, %v516_v35 }
 0x39f   : > { %920 = shalt.err (!%p917_p13)
}
 0x3a0   : > { %s921_s21 = scalar_lea.hbm %s1282_s1, 128  ;;  %s925_s24 = scalar_lea.hbm %s1340_s3, 1024 }
 0x3a1   : > { %p922_p12 = scmp.ne.s32.totalorder %s1282_s1, %s921_s21  ;;  %p926_p7 = scmp.lt.u32.totalorder %s1282_s1, %s1340_s3 }
 0x3a2   : > { %p927_p3 = scmp.lt.u32.totalorder %s925_s24, %s921_s21  ;;  %p929_p4 = scmp.lt.u32.totalorder %s921_s21, %s1282_s1 }
 0x3a3   : > { %p923_p6 = pnand %p922_p12, %p1371_p10 }
 0x3a4   : > { %p928_p0 = por %p927_p3, %p926_p7 }
 0x3a5   : > { %p924_p5 = pneg %p923_p6 }
 0x3a6   : > { %p930_p1 = por %p929_p4, %p928_p0 }
 0x3a8   : > { %p931_p2 = pnand %p930_p1, %p924_p5 }
 0x3aa   : > { %934 = shalt.err (!%p931_p2)
}
 0x3ab   : > { %723 = dma.vmem_to_hbm [thread:$0]  (%p1371_p10), %s1284_s9, 128, %s1282_s1, %s519_s16  }
 0x3ac PF: > { %s1372_s10 = sld [smem:[#allocation19_spill]]  ;;  %p740_p8 = scmp.ge.s32.totalorder %s1009_s19, 2 }
 0x3ad   : > { %s547_s8 = sand.u32 1, %s981_s12  }
 0x3ae   : > { %s548_s23 = scalar_lea.sflag [#allocation7], %s547_s8 }
 0x3b2   : > { %p1373_p9 = scmp.ne.s32.totalorder %s1372_s10, 0 }
 0x3b4   : > { %p736_p11 = pnand %p740_p8, %p1373_p9 }
 0x3b6   : > { %976 = dma.done.wait (!%p736_p11), %s548_s23, 128  }
 0x3b7   : > { %978 = vsyncadd (!%p736_p11), %s548_s23, 4294967168  ;;  %s22_s19 = sadd.s32 1, %s1009_s19   ;;  %s1374_s28 = sld [smem:[#allocation20_spill]] }
 0x3b8   : > { %p19_p13 = scmp.ge.s32.totalorder %s22_s19, 10   ;;  %s1375_s15 = sld [smem:[#allocation15_spill]] }
 0x3b9   : > { %s1376_s16 = sld [smem:[#allocation16_spill]]  ;;  %s1377_s17 = sld [smem:[#allocation17_spill]] }
 0x3ba   : > { %s1378_s18 = sld [smem:[#allocation18_spill]]  ;;  %s1379_s12 = smov %s985_s13 }
 0x3bb   : > { %s1380_s13 = smov %s989_s14  ;;  %21 = sbr.rel (!%p19_p13) target bundleno = 11 (0xb), region = 109 }
 0x3bd   : > { %s1381_s14 = smov %s1374_s28 }
 0x3c2   :  { %553 = vsyncpa [#allocation6], 1 }
 0x3c3   :  { %555 = vsyncpa [#allocation6 + $0x1], 1 }
 0x3c4   :  { %556 = vsyncpa [#allocation9], 1 }
 0x3c5   :  { %558 = vsyncpa [#allocation9 + $0x1], 1 }
 0x3c6   :  { %559 = vsyncpa [#allocation7], 1 }
 0x3c7   :  { %561 = vsyncpa [#allocation7 + $0x1], 1 }

</bundles_post_ra>
